<compile_context>
chip_gen: v6e
topology: v6e:2x2x1
jax: 0.10.0
libtpu: 0.0.40
codegen_flags: <defaults>
</compile_context>

<pallas_src>
import jax
import jax.numpy as jnp
from jax import lax
from jax.experimental import pallas as pl
from jax.experimental.pallas import tpu as pltpu

EPS = 1e-5


def team_stats_kernel(x_ref, w1_ref, b1_ref, w2_ref, b2_ref, w3_ref, b3_ref, o_ref):
    # Layer 1: Linear(input_size, 64) + ReLU   (BN1 folded into W2/b2)
    h = jnp.dot(x_ref[...], w1_ref[...], preferred_element_type=jnp.float32)
    h = jnp.maximum(h + b1_ref[...], 0.0)
    # Dropout(0.5) -> identity in eval mode.

    # Layer 2: (BN1-folded) Linear(64, 32) + ReLU   (BN2 folded into W3/b3)
    h = jnp.dot(h.astype(w2_ref.dtype), w2_ref[...], preferred_element_type=jnp.float32)
    h = jnp.maximum(h + b2_ref[...], 0.0)
    # Dropout(0.5) -> identity in eval mode.

    # Layer 3: (BN2-folded) Linear(32, 16) + ReLU
    h = jnp.dot(h.astype(w3_ref.dtype), w3_ref[...], preferred_element_type=jnp.float32)
    o_ref[...] = jnp.maximum(h + b3_ref[...], 0.0).astype(o_ref.dtype)


def _fold_params(params, matmul_dtype):
    """Fold eval-mode BatchNorm affines into the *next* Linear layer (BN follows ReLU)."""
    s1 = params["g1"] * lax.rsqrt(params["v1"] + EPS)   # (1, 64)
    t1 = params["be1"] - params["m1"] * s1               # (1, 64)
    s2 = params["g2"] * lax.rsqrt(params["v2"] + EPS)   # (1, 32)
    t2 = params["be2"] - params["m2"] * s2               # (1, 32)

    w1 = params["w1"]
    b1 = params["b1"]
    w2 = params["w2"] * s1.T                              # scale rows of (64, 32)
    b2 = t1 @ params["w2"] + params["b2"]
    w3 = params["w3"] * s2.T                              # scale rows of (32, 16)
    b3 = t2 @ params["w3"] + params["b3"]

    return (w1.astype(matmul_dtype), b1.astype(jnp.float32),
            w2.astype(matmul_dtype), b2.astype(jnp.float32),
            w3.astype(matmul_dtype), b3.astype(jnp.float32))


def team_stats_forward(x, params, *, block_m=1024, matmul_dtype=jnp.bfloat16):
    """x: (N, input_size) float32.  params: dict of raw (unfolded) weights.

    matmul_dtype feeds the MXU (bf16 halves the dominant HBM x-stream); accumulation
    and element-wise math stay float32.  Pass jnp.float32 for bit-faithful f32.
    """
    n, in_f = x.shape
    w1, b1, w2, b2, w3, b3 = _fold_params(params, matmul_dtype)

    # Tile the batch: full-array block when small, else block_m rows per grid step.
    tm = n if n <= block_m else block_m
    grid = (pl.cdiv(n, tm),)

    x_in = x.astype(matmul_dtype)
    weights = (w1, b1, w2, b2, w3, b3)

    def resident_spec(shape):                 # constant block index -> stays in VMEM
        return pl.BlockSpec(shape, lambda i: (0, 0))

    in_specs = [pl.BlockSpec((tm, in_f), lambda i: (i, 0))]   # streamed x tile
    in_specs += [resident_spec(w.shape) for w in weights]
    out_specs = pl.BlockSpec((tm, 16), lambda i: (i, 0))

    # Explicit VMEM budget: double-buffered x/out tiles + resident weights + headroom.
    itemsize = jnp.dtype(matmul_dtype).itemsize
    w_bytes = sum(int(w.size) * w.dtype.itemsize for w in weights)
    vmem_limit = 2 * (tm * in_f * itemsize + tm * 16 * 4) + 2 * w_bytes + (4 << 20)
    vmem_limit = int(min(max(vmem_limit, 8 << 20), 64 << 20))

    return pl.pallas_call(
        team_stats_kernel,
        out_shape=jax.ShapeDtypeStruct((n, 16), jnp.float32),
        grid_spec=pltpu.PrefetchScalarGridSpec(
            num_scalar_prefetch=0,
            grid=grid,
            in_specs=in_specs,
            out_specs=out_specs,
        ),
        compiler_params=pltpu.CompilerParams(
            dimension_semantics=("parallel",),   # batch tiles are independent (v7x 2 TCs)
            vmem_limit_bytes=vmem_limit,
        ),
    )(x_in, *weights)


def reference_forward(x, params):
    """Pure-JAX eval-mode reference (unfolded), mirrors the PyTorch module."""
    h = jnp.maximum(x @ params["w1"] + params["b1"], 0.0)
    h = params["g1"] * (h - params["m1"]) * lax.rsqrt(params["v1"] + EPS) + params["be1"]
    h = jnp.maximum(h @ params["w2"] + params["b2"], 0.0)
    h = params["g2"] * (h - params["m2"]) * lax.rsqrt(params["v2"] + EPS) + params["be2"]
    h = jnp.maximum(h @ params["w3"] + params["b3"], 0.0)
    return h


def init_params(key, input_size):
    """PyTorch-default init: Linear U(-1/sqrt(in), 1/sqrt(in)); BN gamma=1, beta=0,
    running_mean=0, running_var=1."""
    def linear(key, fan_in, fan_out):
        kw, kb = jax.random.split(key)
        bound = 1.0 / jnp.sqrt(fan_in)
        w = jax.random.uniform(kw, (fan_in, fan_out), jnp.float32, -bound, bound)
        b = jax.random.uniform(kb, (1, fan_out), jnp.float32, -bound, bound)
        return w, b

    k1, k2, k3 = jax.random.split(key, 3)
    w1, b1 = linear(k1, input_size, 64)
    w2, b2 = linear(k2, 64, 32)
    w3, b3 = linear(k3, 32, 16)

    def bn(c):
        return (jnp.ones((1, c), jnp.float32),   # gamma
                jnp.zeros((1, c), jnp.float32),  # beta
                jnp.zeros((1, c), jnp.float32),  # running mean
                jnp.ones((1, c), jnp.float32))   # running var

    g1, be1, m1, v1 = bn(64)
    g2, be2, m2, v2 = bn(32)

    return dict(w1=w1, b1=b1, g1=g1, be1=be1, m1=m1, v1=v1,
                w2=w2, b2=b2, g2=g2, be2=be2, m2=m2, v2=v2,
                w3=w3, b3=b3)


if __name__ == "__main__":
    key = jax.random.PRNGKey(0)
    k_params, k_rest = jax.random.split(key)

    input_size = 32
    batch = 64

    params = init_params(k_params, input_size)

    # Perturb BN running stats / gamma so the folded-BN path is actually exercised.
    km1, kv1, km2, kv2, kx = jax.random.split(k_rest, 5)
    params["m1"] = 0.1 * jax.random.normal(km1, (1, 64), jnp.float32)
    params["v1"] = jax.random.uniform(kv1, (1, 64), jnp.float32, 0.5, 1.5)
    params["m2"] = 0.1 * jax.random.normal(km2, (1, 32), jnp.float32)
    params["v2"] = jax.random.uniform(kv2, (1, 32), jnp.float32, 0.5, 1.5)

    x = jax.random.normal(kx, (batch, input_size), jnp.float32)
    ref = reference_forward(x, params)

    # f32 path (block_m=16 -> 4 pipelined grid steps): must match the reference closely.
    out_f32 = jax.block_until_ready(
        team_stats_forward(x, params, block_m=16, matmul_dtype=jnp.float32))
    assert out_f32.shape == (batch, 16)
    assert bool(jnp.allclose(out_f32, ref, atol=1e-4, rtol=1e-4))

    # Default bf16-MXU path: loose tolerance (input/activation precision only).
    out_bf16 = jax.block_until_ready(team_stats_forward(x, params, block_m=16))
    assert out_bf16.shape == (batch, 16)
    assert bool(jnp.all(out_bf16 >= 0.0))                       # final ReLU
    assert float(jnp.max(jnp.abs(out_bf16 - ref))) < 0.1

    print("KERNEL_OK")
</pallas_src>

<mosaic_0001>
module attributes {stable_mosaic.version = 11 : i64} {
  func.func @team_stats_kernel(%arg0: i32, %arg1: memref<16x32xf32, #tpu.memory_space<vmem>>, %arg2: memref<32x64xf32, #tpu.memory_space<vmem>>, %arg3: memref<1x64xf32, #tpu.memory_space<vmem>>, %arg4: memref<64x32xf32, #tpu.memory_space<vmem>>, %arg5: memref<1x32xf32, #tpu.memory_space<vmem>>, %arg6: memref<32x16xf32, #tpu.memory_space<vmem>>, %arg7: memref<1x16xf32, #tpu.memory_space<vmem>>, %arg8: memref<16x16xf32, #tpu.memory_space<vmem>>) attributes {dimension_semantics = [#tpu.dimension_semantics<parallel>], iteration_bounds = array<i64: 4>, scalar_prefetch = 0 : i64, scratch_operands = 0 : i64, tpu.core_type = #tpu.core_type<tc>, window_params = [{transform_indices = @transform_0, window_bounds = array<i64: 16, 32>}, {pipeline_mode = #tpu.pipeline_mode<synchronous>, transform_indices = @transform_1, window_bounds = array<i64: 32, 64>}, {pipeline_mode = #tpu.pipeline_mode<synchronous>, transform_indices = @transform_2, window_bounds = array<i64: 1, 64>}, {pipeline_mode = #tpu.pipeline_mode<synchronous>, transform_indices = @transform_3, window_bounds = array<i64: 64, 32>}, {pipeline_mode = #tpu.pipeline_mode<synchronous>, transform_indices = @transform_4, window_bounds = array<i64: 1, 32>}, {pipeline_mode = #tpu.pipeline_mode<synchronous>, transform_indices = @transform_5, window_bounds = array<i64: 32, 16>}, {pipeline_mode = #tpu.pipeline_mode<synchronous>, transform_indices = @transform_6, window_bounds = array<i64: 1, 16>}, {transform_indices = @transform_7, window_bounds = array<i64: 16, 16>}]} {
    %c0 = arith.constant 0 : index
    %c0_0 = arith.constant 0 : index
    %0 = vector.load %arg1[%c0, %c0_0] : memref<16x32xf32, #tpu.memory_space<vmem>>, vector<16x32xf32>
    %c0_1 = arith.constant 0 : index
    %c0_2 = arith.constant 0 : index
    %1 = vector.load %arg2[%c0_1, %c0_2] : memref<32x64xf32, #tpu.memory_space<vmem>>, vector<32x64xf32>
    %cst = arith.constant dense<0.000000e+00> : vector<16x64xf32>
    %2 = tpu.matmul %0, %1, %cst {dimension_numbers = #tpu.dot_dimension_numbers<[1], [0], [0], [1], [0, 0, 1, 1], [], []>} : vector<16x32xf32>, vector<32x64xf32>, vector<16x64xf32> -> vector<16x64xf32>
    %c0_3 = arith.constant 0 : index
    %c0_4 = arith.constant 0 : index
    %3 = vector.load %arg3[%c0_3, %c0_4] : memref<1x64xf32, #tpu.memory_space<vmem>>, vector<1x64xf32>
    %4 = vector.broadcast %3 : vector<1x64xf32> to vector<16x64xf32>
    %5 = arith.addf %2, %4 : vector<16x64xf32>
    %cst_5 = arith.constant 0.000000e+00 : f32
    %6 = vector.broadcast %cst_5 : f32 to vector<16x64xf32>
    %7 = arith.maximumf %5, %6 : vector<16x64xf32>
    %c0_6 = arith.constant 0 : index
    %c0_7 = arith.constant 0 : index
    %8 = vector.load %arg4[%c0_6, %c0_7] : memref<64x32xf32, #tpu.memory_space<vmem>>, vector<64x32xf32>
    %cst_8 = arith.constant dense<0.000000e+00> : vector<16x32xf32>
    %9 = tpu.matmul %7, %8, %cst_8 {dimension_numbers = #tpu.dot_dimension_numbers<[1], [0], [0], [1], [0, 0, 1, 1], [], []>} : vector<16x64xf32>, vector<64x32xf32>, vector<16x32xf32> -> vector<16x32xf32>
    %c0_9 = arith.constant 0 : index
    %c0_10 = arith.constant 0 : index
    %10 = vector.load %arg5[%c0_9, %c0_10] : memref<1x32xf32, #tpu.memory_space<vmem>>, vector<1x32xf32>
    %11 = vector.broadcast %10 : vector<1x32xf32> to vector<16x32xf32>
    %12 = arith.addf %9, %11 : vector<16x32xf32>
    %cst_11 = arith.constant 0.000000e+00 : f32
    %13 = vector.broadcast %cst_11 : f32 to vector<16x32xf32>
    %14 = arith.maximumf %12, %13 : vector<16x32xf32>
    %c0_12 = arith.constant 0 : index
    %c0_13 = arith.constant 0 : index
    %15 = vector.load %arg6[%c0_12, %c0_13] : memref<32x16xf32, #tpu.memory_space<vmem>>, vector<32x16xf32>
    %cst_14 = arith.constant dense<0.000000e+00> : vector<16x16xf32>
    %16 = tpu.matmul %14, %15, %cst_14 {dimension_numbers = #tpu.dot_dimension_numbers<[1], [0], [0], [1], [0, 0, 1, 1], [], []>} : vector<16x32xf32>, vector<32x16xf32>, vector<16x16xf32> -> vector<16x16xf32>
    %c0_15 = arith.constant 0 : index
    %c0_16 = arith.constant 0 : index
    %17 = vector.load %arg7[%c0_15, %c0_16] : memref<1x16xf32, #tpu.memory_space<vmem>>, vector<1x16xf32>
    %18 = vector.broadcast %17 : vector<1x16xf32> to vector<16x16xf32>
    %19 = arith.addf %16, %18 : vector<16x16xf32>
    %cst_17 = arith.constant 0.000000e+00 : f32
    %20 = vector.broadcast %cst_17 : f32 to vector<16x16xf32>
    %21 = arith.maximumf %19, %20 : vector<16x16xf32>
    %c0_18 = arith.constant 0 : index
    %c0_19 = arith.constant 0 : index
    %22 = vector.load %arg8[%c0_18, %c0_19] : memref<16x16xf32, #tpu.memory_space<vmem>>, vector<16x16xf32>
    tpu.vector_store %arg8[%c0_18, %c0_19], %21 {strides = array<i32>} : memref<16x16xf32, #tpu.memory_space<vmem>>, vector<16x16xf32>,
    return
  }
  func.func @transform_0(%arg0: i32) -> (i32, i32) {
    %c0_i32 = arith.constant 0 : i32
    %c0_i32_0 = arith.constant 0 : i32
    return %arg0, %c0_i32 : i32, i32
  }
  func.func @transform_1(%arg0: i32) -> (i32, i32) {
    %c0_i32 = arith.constant 0 : i32
    %c0_i32_0 = arith.constant 0 : i32
    %c0_i32_1 = arith.constant 0 : i32
    return %c0_i32, %c0_i32_0 : i32, i32
  }
  func.func @transform_2(%arg0: i32) -> (i32, i32) {
    %c0_i32 = arith.constant 0 : i32
    %c0_i32_0 = arith.constant 0 : i32
    %c0_i32_1 = arith.constant 0 : i32
    return %c0_i32, %c0_i32_0 : i32, i32
  }
  func.func @transform_3(%arg0: i32) -> (i32, i32) {
    %c0_i32 = arith.constant 0 : i32
    %c0_i32_0 = arith.constant 0 : i32
    %c0_i32_1 = arith.constant 0 : i32
    return %c0_i32, %c0_i32_0 : i32, i32
  }
  func.func @transform_4(%arg0: i32) -> (i32, i32) {
    %c0_i32 = arith.constant 0 : i32
    %c0_i32_0 = arith.constant 0 : i32
    %c0_i32_1 = arith.constant 0 : i32
    return %c0_i32, %c0_i32_0 : i32, i32
  }
  func.func @transform_5(%arg0: i32) -> (i32, i32) {
    %c0_i32 = arith.constant 0 : i32
    %c0_i32_0 = arith.constant 0 : i32
    %c0_i32_1 = arith.constant 0 : i32
    return %c0_i32, %c0_i32_0 : i32, i32
  }
  func.func @transform_6(%arg0: i32) -> (i32, i32) {
    %c0_i32 = arith.constant 0 : i32
    %c0_i32_0 = arith.constant 0 : i32
    %c0_i32_1 = arith.constant 0 : i32
    return %c0_i32, %c0_i32_0 : i32, i32
  }
  func.func @transform_7(%arg0: i32) -> (i32, i32) {
    %c0_i32 = arith.constant 0 : i32
    %c0_i32_0 = arith.constant 0 : i32
    return %arg0, %c0_i32 : i32, i32
  }
}

</mosaic_0001>

<bundles_post_ra>
// kernel: tpu_custom_call.1
= control target key start
LH: loop header
LB: loop body
LE: loop exit
PB: predicated region body
PF: predicated region fallthrough
CT: control target
= control target key end

     0   :  { %s770_s24 = smov 0   ;;  %s855_s0 = inlined_call_operand.vmem [shape: f32[64,32], index: 0, kind: input, shape index: {}]   ;;  %s856_s1 = inlined_call_operand.vmem [shape: f32[32,64], index: 1, kind: input, shape index: {}]   ;;  %s857_s2 = inlined_call_operand.vmem [shape: f32[1,64], index: 2, kind: input, shape index: {}]   ;;  %s858_s3 = inlined_call_operand.vmem [shape: f32[64,32], index: 3, kind: input, shape index: {}]   ;;  %s859_s4 = inlined_call_operand.vmem [shape: f32[1,32], index: 4, kind: input, shape index: {}]   ;;  %s860_s5 = inlined_call_operand.vmem [shape: f32[32,16], index: 5, kind: input, shape index: {}]   ;;  %s861_s6 = inlined_call_operand.vmem [shape: f32[1,16], index: 6, kind: input, shape index: {}]   ;;  %s862_s7 = inlined_call_operand.vmem [shape: f32[64,16], index: 7, kind: output, shape index: {}]  }
   0x1 LB: > { %s631_s25 = sadd.s32 4294967295, %s728_s24   ;;  %p635_p0 = scmp.ge.s32.totalorder %s728_s24, 1  ;;  %s728_s24 = sphi %s770_s24, %s17_s24  }
   0x2   : > { %p238_p1 = scmp.lt.s32.totalorder %s728_s24, 5 }
   0x4   : > { %p239_p2 = pnand %p635_p0, %p238_p1 }
   0x5   : > { %s636_s30 = sshll.u32 (!%p239_p2), %s631_s25, 1 }
   0x6   : > { %242 = sbr.rel (%p239_p2) target bundleno = 620 (0x26c), region = 48  ;;  %p271_p3 = scmp.lt.s32.totalorder (!%p239_p2), %s636_s30, 7 }
   0xb   : > { %v287_v0 = vld [vmem:[%s856_s1 + $0x18] sm:$0xff]  ;;  %v286_v1 = vld [vmem:[%s856_s1 + $0x10] sm:$0xff]  ;;  %v285_v4 = vld [vmem:[%s856_s1 + $0x8] sm:$0xff]  ;;  %s864_s30 = smov (!%p271_p3, %s636_s30), 7  ;;  %vm295_vm0 = vcmask 261120   ;;  %vm394_vm1 = vcmask 523264  }
   0xc   : > { %673 = vmatprep.subr.mxu0 %v287_v0  ;;  %v386_v2 = vld [vmem:[%s858_s3 + $0x38] sm:$0xff]  ;;  %v385_v3 = vld [vmem:[%s858_s3 + $0x30] sm:$0xff]  ;;  %v384_v5 = vld [vmem:[%s858_s3 + $0x28] sm:$0xff]  ;;  %s637_s18 = sshll.u32 %s864_s30, 3  ;;  %vm572_vm2 = vcmask 130048  }
   0xd   : > { %674 = vmatpush3.msra.mxu0 %v287_v0  ;;  %684 = vmatprep.subr.mxu1 %v386_v2  ;;  %v284_v6 = vld [vmem:[%s856_s1] sm:$0xff]  ;;  %s274_s21 = scalar_lea.vmem %s855_s0, %s637_s18  ;;  %v382_v10 = vld [vmem:[%s858_s3 + $0x18] sm:$0xff]  ;;  %v381_v11 = vld [vmem:[%s858_s3 + $0x10] sm:$0xff]  ;;  %s280_s29 = scalar_lea.vmem %s862_s7, %s637_s18 }
   0xe   : > { %675 = vmatprep.subr.mxu0 %v286_v1  ;;  %685 = vmatpush3.msra.mxu1 %v386_v2  ;;  %v383_v7 = vld [vmem:[%s858_s3 + $0x20] sm:$0xff]  ;;  %v283_v9 = vld [vmem:[%s274_s21 + $0x8] sm:$0xff]  ;;  %v481_v21 = vld [vmem:[%s860_s5 + $0x18] sm:$0xff] }
   0xf   : > { %676 = vmatpush3.msra.mxu0 %v286_v1  ;;  %686 = vmatprep.subr.mxu1 %v385_v3  ;;  %v282_v8 = vld [vmem:[%s274_s21] sm:$0xff]  ;;  %v380_v12 = vld [vmem:[%s858_s3 + $0x8] sm:$0xff]  ;;  %v480_v22 = vld [vmem:[%s860_s5 + $0x10] sm:$0xff] }
  0x10   : > { %677 = vmatprep.subr.mxu0 %v285_v4  ;;  %687 = vmatpush3.msra.mxu1 %v385_v3  ;;  %v379_v13 = vld [vmem:[%s858_s3] sm:$0xff]  ;;  %v479_v23 = vld [vmem:[%s860_s5 + $0x8] sm:$0xff] }
  0x11   : > { %678 = vmatpush3.msra.mxu0 %v285_v4  ;;  %688 = vmatprep.subr.mxu1 %v384_v5  ;;  %v640_v14 = vld [vmem:[%s857_s2] ss:$0 sm:$0xff] }
  0x12   : > { %679 = vmatprep.subr.mxu0 %v284_v6  ;;  %689 = vmatpush3.msra.mxu1 %v384_v5  ;;  %v478_v24 = vld [vmem:[%s860_s5] sm:$0xff] }
  0x13   : > { %680 = vmatpush3.msra.mxu0 %v284_v6  ;;  %681 = vmatprep.mubr.msk.f32.mxu0 %vm295_vm0, %v282_v8  ;;  %v643_v25 = vld [vmem:[%s859_s4] ss:$0 sm:$0xff] }
  0x14   : > { %682 = vmatmul.mubr.msk.f32.vlgmr.msra.gmra.mxu0 %vm295_vm0, %v283_v9  ;;  %690 = vmatprep.subr.mxu1 %v383_v7  ;;  %v646_v32 = vld [vmem:[%s861_s6] ss:$0 sm:$0xff] }
  0x15   : > { %691 = vmatpush3.msra.mxu1 %v383_v7  ;;  %703 = vmatprep.subr.mxu0 %v481_v21 }
  0x16   : > { %692 = vmatprep.subr.mxu1 %v382_v10  ;;  %704 = vmatpush3.msra.mxu0 %v481_v21 }
  0x17   : > { %693 = vmatpush3.msra.mxu1 %v382_v10  ;;  %705 = vmatprep.subr.mxu0 %v480_v22 }
  0x18   : > { %694 = vmatprep.subr.mxu1 %v381_v11  ;;  %706 = vmatpush3.msra.mxu0 %v480_v22 }
  0x19   : > { %695 = vmatpush3.msra.mxu1 %v381_v11  ;;  %707 = vmatprep.subr.mxu0 %v479_v23 }
  0x1a   : > { %696 = vmatprep.subr.mxu1 %v380_v12  ;;  %708 = vmatpush3.msra.mxu0 %v479_v23 }
  0x1b   : > { %697 = vmatpush3.msra.mxu1 %v380_v12  ;;  %709 = vmatprep.subr.mxu0 %v478_v24 }
  0x1c   : > { %698 = vmatprep.subr.mxu1 %v379_v13  ;;  %710 = vmatpush3.msra.mxu0 %v478_v24 }
  0x1d   : > { %699 = vmatpush3.msra.mxu1 %v379_v13 }
  0xd4   : > { %v683_v15 = vpop.f32.mrf.mxu0 }
  0xd5   : > { %v374_v16 = vadd.f32 %v683_v15, %v640_v14 }
  0xd6   : > { %v368_v17 = vpop.f32.mrf.mxu0 }
  0xd7   : > { %v369_v18 = vadd.f32 %v640_v14, %v368_v17  ;;  %v378_v20 = vmax.f32 %v374_v16, 0.0 }
  0xd9   : > { %v377_v19 = vmax.f32 %v369_v18, 0.0 }
  0xdb   : > { %700 = vmatprep.mubr.msk.f32.mxu1 %vm394_vm1, %v377_v19 }
  0xdc   : > { %701 = vmatmul.mubr.msk.f32.vlgmr.msra.gmra.mxu1 %vm394_vm1, %v378_v20 }
 0x19c   : > { %v702_v26 = vpop.f32.mrf.mxu1 }
 0x19d   : > { %v473_v27 = vadd.f32 %v702_v26, %v643_v25 }
 0x19e   : > { %v467_v28 = vpop.f32.mrf.mxu1 }
 0x19f   : > { %v468_v29 = vadd.f32 %v643_v25, %v467_v28  ;;  %v477_v31 = vmax.f32 %v473_v27, 0.0 }
 0x1a1   : > { %v476_v30 = vmax.f32 %v468_v29, 0.0 }
 0x1a3   : > { %711 = vmatprep.mubr.msk.f32.mxu0 %vm295_vm0, %v476_v30 }
 0x1a4   : > { %712 = vmatmul.mubr.msk.f32.vlgmr.msra.gmra.mxu0 %vm295_vm0, %v477_v31 }
 0x264   : > { %v713_v33 = vpop.f32.mrf.mxu0 }
 0x265   : > { %v567_v34 = vadd.f32 %v713_v33, %v646_v32 }
 0x266   : > { %v561_v35 = vpop.f32.mrf.mxu0 }
 0x267   : > { %v562_v36 = vadd.f32 %v646_v32, %v561_v35  ;;  %v571_v38 = vmax.f32 %v567_v34, 0.0 }
 0x269   : > { %v570_v37 = vmax.f32 %v562_v36, 0.0  ;;  %574 = vst.msk [vmem:[%s280_s29 + $0x8] sm:$0xff] %vm572_vm2, %v571_v38 }
 0x26b   : > { %573 = vst.msk [vmem:[%s280_s29] sm:$0xff] %vm572_vm2, %v570_v37 }
 0x26c PF: > { %s17_s24 = sadd.s32 1, %s728_s24  }
 0x26d   : > { %p14_p4 = scmp.ge.s32.totalorder %s17_s24, 6  }
 0x26f   :  { %16 = sbr.rel (!%p14_p4) target bundleno = 1 (0x1), region = 78 }

</bundles_post_ra>
